<compile_context>
chip_gen: v7x
topology: tpu7x:2x2x1
jax: 0.10.0
libtpu: 0.0.40
codegen_flags: <defaults>
</compile_context>

<pallas_src>
import jax
import jax.numpy as jnp
from jax import lax
from jax.experimental import pallas as pl
from jax.experimental.pallas import tpu as pltpu

# ----------------------- model dimensions (small, synthetic) -----------------------
NUM_NODES = 16
RAW_DIM = 8                                   # raw_msg_dim
MEM_DIM = 32                                  # memory_dim
TIME_DIM = 16                                 # time_dim
MSG_DIM = 2 * MEM_DIM + RAW_DIM + TIME_DIM    # IdentityMessage.out_channels = 88
XH_DIM = MSG_DIM + MEM_DIM                    # [aggr | h] width = 120
GATE_DIM = 3 * MEM_DIM                        # GRU gate width = 96


# ------------------------------- fused Pallas kernel --------------------------------
def _tgn_fused_kernel(
    n_id_ref,     # (n, 1)              i32   nodes being updated
    src_ref,      # (1, m)              i32   message source node ids (row layout)
    dst_ref,      # (1, m)              i32
    t_ref,        # (1, m)              i32   message timestamps
    raw_ref,      # (m, RAW_DIM)        f32
    mem_ref,      # (NUM_NODES, MEM_DIM) f32  memory table (VMEM-resident, tiny)
    lu_ref,       # (1, NUM_NODES)      i32   last_update table
    wt_ref,       # (1, TIME_DIM)       f32   TimeEncoder Linear(1, T).weight^T
    bt_ref,       # (1, TIME_DIM)       f32   TimeEncoder bias
    w_blk_ref,    # (XH_DIM, 2*GATE_DIM) bf16 block-diag [[W_ih^T, 0], [0, W_hh^T]]
    brz_ref,      # (1, 2*MEM_DIM)      f32   folded r/z biases (b_ih + b_hh)
    bin_ref,      # (1, MEM_DIM)        f32   b_ih, n gate
    bhn_ref,      # (1, MEM_DIM)        f32   b_hh, n gate
    new_mem_ref,  # (n, MEM_DIM)        f32   out
    new_lu_ref,   # (n, 1)              i32   out
):
    n = n_id_ref.shape[0]
    m = src_ref.shape[1]
    num_nodes, hdim = mem_ref.shape
    gd = 3 * hdim
    f32 = jnp.float32

    mem = mem_ref[...]
    n_id = n_id_ref[...]                                              # (n, 1)

    # ---- LastAggregator: select FIRST, on (src, t) only ----------------------------
    neg = jnp.int32(jnp.iinfo(jnp.int32).min + 1)
    slot_mask = n_id == src_ref[...]                                  # (n, m)
    t_masked = jnp.where(slot_mask, t_ref[...], neg)                  # (n, m)
    seg_max_t = jnp.max(t_masked, axis=-1, keepdims=True)             # (n, 1)
    # explicit "has any message" mask (does not rely on the int32 sentinel value)
    has_msg = jnp.max(jnp.where(slot_mask, 1, 0), axis=-1, keepdims=True) > 0
    pos = lax.broadcasted_iota(jnp.int32, (n, m), 1)
    cand = jnp.logical_and(slot_mask, t_masked == seg_max_t)
    argpos = jnp.max(jnp.where(cand, pos, -1), axis=-1, keepdims=True)
    sel_b = jnp.logical_and(cand, pos == argpos)                      # (n, m) one-hot

    # ---- THEN gather, O(n) rows only ------------------------------------------------
    nid_iota = lax.broadcasted_iota(jnp.int32, (n, num_nodes), 1)
    onehot_nid = n_id == nid_iota                                     # (n, num_nodes)
    h = jnp.dot(onehot_nid.astype(f32), mem, preferred_element_type=f32)     # (n, H)
    lu_nid = jnp.sum(jnp.where(onehot_nid, lu_ref[...], 0),
                     axis=-1, keepdims=True)                          # (n, 1) i32

    # selected dst id per node (exact integer select) -> memory[dst_sel]
    dst_sel = jnp.sum(jnp.where(sel_b, dst_ref[...], 0), axis=-1, keepdims=True)
    mem_dst = jnp.dot((dst_sel == nid_iota).astype(f32), mem,
                      preferred_element_type=f32)                     # (n, H)
    raw_sel = jnp.dot(sel_b.astype(f32), raw_ref[...],
                      preferred_element_type=f32)                     # (n, RAW_DIM)

    # ---- TimeEncoder of the selected message only: t_rel = t_sel - last_update[n_id]
    t_rel = jnp.where(has_msg, seg_max_t - lu_nid, 0).astype(f32)     # (n, 1)
    t_enc = jnp.cos(t_rel * wt_ref[...] + bt_ref[...])                # (n, TIME_DIM)

    # ---- IdentityMessage of the winner + GRUCell: one bf16 block-diag MXU pass -----
    # memory[src] of the winner == memory[n_id] == h; zero the whole message for
    # nodes without pending messages (LastAggregator semantics).
    v = has_msg.astype(f32)                                           # (n, 1)
    xh = jnp.concatenate(
        [h * v, mem_dst * v, raw_sel * v, t_enc * v, h], axis=-1)     # (n, XH_DIM)
    gates = jnp.dot(xh.astype(jnp.bfloat16), w_blk_ref[...],
                    preferred_element_type=f32)                       # (n, 2*GATE_DIM)
    gi = gates[:, 0:gd]
    gh = gates[:, gd:2 * gd]
    rz = jax.nn.sigmoid(gi[:, 0:2 * hdim] + gh[:, 0:2 * hdim] + brz_ref[...])
    r = rz[:, 0:hdim]
    z = rz[:, hdim:2 * hdim]
    g = jnp.tanh(gi[:, 2 * hdim:gd] + bin_ref[...]
                 + r * (gh[:, 2 * hdim:gd] + bhn_ref[...]))
    new_mem_ref[...] = ((1.0 - z) * g + z * h).astype(new_mem_ref.dtype)

    # ---- last_update: scatter-max of t into a zero buffer, restricted to n_id ------
    new_lu_ref[...] = jnp.where(has_msg, jnp.maximum(seg_max_t, 0), 0)


# ---------------------------------- wrapper ------------------------------------------
def tgn_get_updated_memory(n_id, memory, last_update, store_s, store_d, prepped):
    """Fused-Pallas equivalent of TGNMemory._get_updated_memory (training forward)."""
    n = n_id.shape[0]
    num_nodes, mem_dim = memory.shape

    # Merge the two (already flattened) message stores — sanctioned pre-call concat.
    src = jnp.concatenate([store_s[0], store_d[0]]).astype(jnp.int32)
    dst = jnp.concatenate([store_s[1], store_d[1]]).astype(jnp.int32)
    t = jnp.concatenate([store_s[2], store_d[2]]).astype(jnp.int32)
    raw = jnp.concatenate([store_s[3], store_d[3]], axis=0).astype(jnp.float32)
    m = src.shape[0]

    vmem = pl.BlockSpec(memory_space=pltpu.MemorySpace.VMEM)
    new_mem, new_lu = pl.pallas_call(
        _tgn_fused_kernel,
        out_shape=(jax.ShapeDtypeStruct((n, mem_dim), jnp.float32),
                   jax.ShapeDtypeStruct((n, 1), jnp.int32)),
        in_specs=[vmem] * 13,
        out_specs=(vmem, vmem),
    )(
        n_id.reshape(n, 1).astype(jnp.int32),
        src.reshape(1, m),
        dst.reshape(1, m),
        t.reshape(1, m),
        raw,
        memory.astype(jnp.float32),
        last_update.reshape(1, num_nodes).astype(jnp.int32),
        prepped["w_time"], prepped["b_time"],
        prepped["w_blk"], prepped["b_rz"], prepped["b_in"], prepped["b_hn"],
    )
    return new_mem, new_lu.reshape(n)


# ------------------------------ parameter handling -----------------------------------
def _init_params(key):
    ks = jax.random.split(key, 6)
    s_t = 1.0                                      # Linear(1, time_dim) fan-in
    s_g = 1.0 / jnp.sqrt(jnp.float32(MEM_DIM))     # GRUCell init scale
    u = lambda k, shape, s: jax.random.uniform(k, shape, jnp.float32, -s, s)
    return {
        "w_time": u(ks[0], (1, TIME_DIM), s_t),            # Linear(1,T).weight^T
        "b_time": u(ks[1], (1, TIME_DIM), s_t),
        "w_ih_t": u(ks[2], (MSG_DIM, 3 * MEM_DIM), s_g),   # GRU weight_ih^T (r,z,n)
        "w_hh_t": u(ks[3], (MEM_DIM, 3 * MEM_DIM), s_g),   # GRU weight_hh^T
        "b_ih":   u(ks[4], (1, 3 * MEM_DIM), s_g),
        "b_hh":   u(ks[5], (1, 3 * MEM_DIM), s_g),
    }


def prepare_params(p):
    """One-time packing:
       - block-diagonal GRU weight (bf16, native MXU path): [xh(120)] @ w_blk = [gi|gh]
       - r/z biases folded (b_ih + b_hh); n-gate biases kept separate (gh_n * r)."""
    w_blk = jnp.zeros((XH_DIM, 2 * GATE_DIM), jnp.float32)
    w_blk = w_blk.at[:MSG_DIM, :GATE_DIM].set(p["w_ih_t"])
    w_blk = w_blk.at[MSG_DIM:, GATE_DIM:].set(p["w_hh_t"])
    return {
        "w_time": p["w_time"], "b_time": p["b_time"],
        "w_blk": w_blk.astype(jnp.bfloat16),
        "b_rz": (p["b_ih"] + p["b_hh"])[:, :2 * MEM_DIM],
        "b_in": p["b_ih"][:, 2 * MEM_DIM:],
        "b_hn": p["b_hh"][:, 2 * MEM_DIM:],
    }


# --------------------------- pure-JAX reference (sanity) ------------------------------
def tgn_reference(n_id, memory, last_update, store_s, store_d, p):
    num_nodes = memory.shape[0]
    n = n_id.shape[0]
    hp = jax.lax.Precision.HIGHEST

    def compute_msg(store):
        src, dst, t, raw = store
        t_rel = (t - last_update[src]).astype(jnp.float32)[:, None]
        t_enc = jnp.cos(t_rel * p["w_time"] + p["b_time"])
        msg = jnp.concatenate([memory[src], memory[dst], raw, t_enc], axis=-1)
        return msg, t, src

    msg_s, t_s, src_s = compute_msg(store_s)
    msg_d, t_d, src_d = compute_msg(store_d)
    idx_nodes = jnp.concatenate([src_s, src_d])
    msg = jnp.concatenate([msg_s, msg_d], axis=0)
    t = jnp.concatenate([t_s, t_d])
    m = t.shape[0]

    assoc = jnp.zeros((num_nodes,), jnp.int32).at[n_id].set(jnp.arange(n, dtype=jnp.int32))
    slot = assoc[idx_nodes]
    seg_max = jax.ops.segment_max(t, slot, num_segments=n)
    pos = jnp.arange(m, dtype=jnp.int32)
    key = jnp.where(t == seg_max[slot], pos, -1)
    argmax = jax.ops.segment_max(key, slot, num_segments=n)
    valid = argmax >= 0
    aggr = jnp.where(valid[:, None], msg[jnp.clip(argmax, 0, m - 1)], 0.0)

    h = memory[n_id]
    gi = jnp.dot(aggr, p["w_ih_t"], precision=hp) + p["b_ih"]
    gh = jnp.dot(h, p["w_hh_t"], precision=hp) + p["b_hh"]
    H = h.shape[1]
    r = jax.nn.sigmoid(gi[:, :H] + gh[:, :H])
    z = jax.nn.sigmoid(gi[:, H:2 * H] + gh[:, H:2 * H])
    g = jnp.tanh(gi[:, 2 * H:] + r * gh[:, 2 * H:])
    new_mem = (1.0 - z) * g + z * h

    lu_all = jnp.maximum(jax.ops.segment_max(t, idx_nodes, num_segments=num_nodes), 0)
    return new_mem, lu_all[n_id]


# --------------------------------------- demo ----------------------------------------
if __name__ == "__main__":
    key = jax.random.PRNGKey(0)
    kp, km, kl, ks1, ks2, ks3, kd1, kd2, kd3 = jax.random.split(key, 9)

    params = _init_params(kp)
    prepped = prepare_params(params)

    # Persistent buffers
    memory = jax.random.normal(km, (NUM_NODES, MEM_DIM), jnp.float32)
    last_update = jax.random.randint(kl, (NUM_NODES,), 0, 10, jnp.int32)

    # Nodes to update and synthetic flattened message stores: K messages/node/store.
    N, K = 8, 2
    n_id = jnp.arange(N, dtype=jnp.int32)

    def make_store(k_dst, k_t, k_raw):
        src = jnp.repeat(n_id, K)                                     # (N*K,)
        dst = jax.random.randint(k_dst, (N * K,), 0, NUM_NODES, jnp.int32)
        t = jax.random.randint(k_t, (N * K,), 10, 50, jnp.int32)
        raw = jax.random.normal(k_raw, (N * K, RAW_DIM), jnp.float32)
        return (src, dst, t, raw)

    store_s = make_store(ks1, ks2, ks3)   # src-directed messages
    store_d = make_store(kd1, kd2, kd3)   # dst-directed messages

    fwd = jax.jit(tgn_get_updated_memory)
    new_mem, new_lu = fwd(n_id, memory, last_update, store_s, store_d, prepped)
    jax.block_until_ready((new_mem, new_lu))

    # sanity check against a pure-JAX f32 reference (same tie-break convention)
    ref_mem, ref_lu = jax.jit(tgn_reference)(n_id, memory, last_update,
                                             store_s, store_d, params)
    jax.block_until_ready((ref_mem, ref_lu))

    assert new_mem.shape == (N, MEM_DIM) and new_mem.dtype == jnp.float32
    assert new_lu.shape == (N,)
    assert bool(jnp.all(jnp.isfinite(new_mem)))
    # Kernel GRU matmul runs in bf16 (native MXU) with f32 accumulation; reference is
    # f32 HIGHEST, hence the slightly relaxed tolerance. last_update is exact integer.
    assert bool(jnp.allclose(new_mem, ref_mem, atol=3e-2, rtol=2e-2)), "memory mismatch"
    assert bool(jnp.array_equal(new_lu, ref_lu.astype(new_lu.dtype))), "last_update mismatch"

    print("KERNEL_OK")
</pallas_src>

<mosaic_0001>
module attributes {stable_mosaic.version = 11 : i64} {
  func.func @_tgn_fused_kernel(%arg0: memref<8x1xi32, #tpu.memory_space<vmem>>, %arg1: memref<1x32xi32, #tpu.memory_space<vmem>>, %arg2: memref<1x32xi32, #tpu.memory_space<vmem>>, %arg3: memref<1x32xi32, #tpu.memory_space<vmem>>, %arg4: memref<32x8xf32, #tpu.memory_space<vmem>>, %arg5: memref<16x32xf32, #tpu.memory_space<vmem>>, %arg6: memref<1x16xi32, #tpu.memory_space<vmem>>, %arg7: memref<1x16xf32, #tpu.memory_space<vmem>>, %arg8: memref<1x16xf32, #tpu.memory_space<vmem>>, %arg9: memref<120x192xbf16, #tpu.memory_space<vmem>>, %arg10: memref<1x64xf32, #tpu.memory_space<vmem>>, %arg11: memref<1x32xf32, #tpu.memory_space<vmem>>, %arg12: memref<1x32xf32, #tpu.memory_space<vmem>>, %arg13: memref<8x32xf32, #tpu.memory_space<vmem>>, %arg14: memref<8x1xi32, #tpu.memory_space<vmem>>) attributes {dimension_semantics = [], scalar_prefetch = 0 : i64, scratch_operands = 0 : i64, tpu.core_type = #tpu.core_type<tc>} {
    %c0 = arith.constant 0 : index
    %c0_0 = arith.constant 0 : index
    %0 = vector.load %arg5[%c0, %c0_0] : memref<16x32xf32, #tpu.memory_space<vmem>>, vector<16x32xf32>
    %c0_1 = arith.constant 0 : index
    %c0_2 = arith.constant 0 : index
    %1 = vector.load %arg0[%c0_1, %c0_2] : memref<8x1xi32, #tpu.memory_space<vmem>>, vector<8x1xi32>
    %c0_3 = arith.constant 0 : index
    %c0_4 = arith.constant 0 : index
    %2 = vector.load %arg1[%c0_3, %c0_4] : memref<1x32xi32, #tpu.memory_space<vmem>>, vector<1x32xi32>
    %3 = vector.broadcast %1 : vector<8x1xi32> to vector<8x32xi32>
    %4 = vector.broadcast %2 : vector<1x32xi32> to vector<8x32xi32>
    %5 = arith.cmpi eq, %3, %4 : vector<8x32xi32>
    %c0_5 = arith.constant 0 : index
    %c0_6 = arith.constant 0 : index
    %6 = vector.load %arg3[%c0_5, %c0_6] : memref<1x32xi32, #tpu.memory_space<vmem>>, vector<1x32xi32>
    %c-2147483647_i32 = arith.constant -2147483647 : i32
    %7 = vector.shape_cast %6 : vector<1x32xi32> to vector<1x32xi32>
    %8 = vector.broadcast %7 : vector<1x32xi32> to vector<8x32xi32>
    %9 = vector.broadcast %c-2147483647_i32 : i32 to vector<8x32xi32>
    %10 = arith.select %5, %8, %9 : vector<8x32xi1>, vector<8x32xi32>
    %cst = arith.constant dense<-2147483648> : vector<8xi32>
    %11 = vector.multi_reduction <maxsi>, %10, %cst [1] : vector<8x32xi32> to vector<8xi32>
    %12 = vector.shape_cast %11 : vector<8xi32> to vector<8x1xi32>
    %c1_i32 = arith.constant 1 : i32
    %c0_i32 = arith.constant 0 : i32
    %13 = vector.broadcast %c1_i32 : i32 to vector<8x32xi32>
    %14 = vector.broadcast %c0_i32 : i32 to vector<8x32xi32>
    %15 = arith.select %5, %13, %14 : vector<8x32xi1>, vector<8x32xi32>
    %cst_7 = arith.constant dense<-2147483648> : vector<8xi32>
    %16 = vector.multi_reduction <maxsi>, %15, %cst_7 [1] : vector<8x32xi32> to vector<8xi32>
    %17 = vector.shape_cast %16 : vector<8xi32> to vector<8x1xi32>
    %c0_i32_8 = arith.constant 0 : i32
    %18 = vector.broadcast %c0_i32_8 : i32 to vector<8x1xi32>
    %19 = arith.cmpi sgt, %17, %18 : vector<8x1xi32>
    %20 = tpu.iota {dimensions = array<i32: 1>} : vector<8x32xi32>
    %21 = vector.broadcast %12 : vector<8x1xi32> to vector<8x32xi32>
    %22 = arith.cmpi eq, %10, %21 : vector<8x32xi32>
    %23 = arith.andi %5, %22 : vector<8x32xi1>
    %c-1_i32 = arith.constant -1 : i32
    %24 = vector.broadcast %c-1_i32 : i32 to vector<8x32xi32>
    %25 = arith.select %23, %20, %24 : vector<8x32xi1>, vector<8x32xi32>
    %cst_9 = arith.constant dense<-2147483648> : vector<8xi32>
    %26 = vector.multi_reduction <maxsi>, %25, %cst_9 [1] : vector<8x32xi32> to vector<8xi32>
    %27 = vector.shape_cast %26 : vector<8xi32> to vector<8x1xi32>
    %28 = vector.broadcast %27 : vector<8x1xi32> to vector<8x32xi32>
    %29 = arith.cmpi eq, %20, %28 : vector<8x32xi32>
    %30 = arith.andi %23, %29 : vector<8x32xi1>
    %31 = tpu.iota {dimensions = array<i32: 1>} : vector<8x16xi32>
    %32 = vector.broadcast %1 : vector<8x1xi32> to vector<8x16xi32>
    %33 = arith.cmpi eq, %32, %31 : vector<8x16xi32>
    %34 = arith.extui %33 : vector<8x16xi1> to vector<8x16xi32>
    %35 = arith.sitofp %34 : vector<8x16xi32> to vector<8x16xf32>
    %cst_10 = arith.constant dense<0.000000e+00> : vector<8x32xf32>
    %36 = tpu.matmul %35, %0, %cst_10 {dimension_numbers = #tpu.dot_dimension_numbers<[1], [0], [0], [1], [0, 0, 1, 1], [], []>} : vector<8x16xf32>, vector<16x32xf32>, vector<8x32xf32> -> vector<8x32xf32>
    %c0_11 = arith.constant 0 : index
    %c0_12 = arith.constant 0 : index
    %37 = vector.load %arg6[%c0_11, %c0_12] : memref<1x16xi32, #tpu.memory_space<vmem>>, vector<1x16xi32>
    %c0_i32_13 = arith.constant 0 : i32
    %38 = vector.shape_cast %37 : vector<1x16xi32> to vector<1x16xi32>
    %39 = vector.broadcast %38 : vector<1x16xi32> to vector<8x16xi32>
    %40 = vector.broadcast %c0_i32_13 : i32 to vector<8x16xi32>
    %41 = arith.select %33, %39, %40 : vector<8x16xi1>, vector<8x16xi32>
    %cst_14 = arith.constant dense<0> : vector<8xi32>
    %42 = vector.multi_reduction <add>, %41, %cst_14 [1] : vector<8x16xi32> to vector<8xi32>
    %43 = vector.shape_cast %42 : vector<8xi32> to vector<8x1xi32>
    %c0_15 = arith.constant 0 : index
    %c0_16 = arith.constant 0 : index
    %44 = vector.load %arg2[%c0_15, %c0_16] : memref<1x32xi32, #tpu.memory_space<vmem>>, vector<1x32xi32>
    %c0_i32_17 = arith.constant 0 : i32
    %45 = vector.shape_cast %44 : vector<1x32xi32> to vector<1x32xi32>
    %46 = vector.broadcast %45 : vector<1x32xi32> to vector<8x32xi32>
    %47 = vector.broadcast %c0_i32_17 : i32 to vector<8x32xi32>
    %48 = arith.select %30, %46, %47 : vector<8x32xi1>, vector<8x32xi32>
    %cst_18 = arith.constant dense<0> : vector<8xi32>
    %49 = vector.multi_reduction <add>, %48, %cst_18 [1] : vector<8x32xi32> to vector<8xi32>
    %50 = vector.shape_cast %49 : vector<8xi32> to vector<8x1xi32>
    %51 = vector.broadcast %50 : vector<8x1xi32> to vector<8x16xi32>
    %52 = arith.cmpi eq, %51, %31 : vector<8x16xi32>
    %53 = arith.extui %52 : vector<8x16xi1> to vector<8x16xi32>
    %54 = arith.sitofp %53 : vector<8x16xi32> to vector<8x16xf32>
    %cst_19 = arith.constant dense<0.000000e+00> : vector<8x32xf32>
    %55 = tpu.matmul %54, %0, %cst_19 {dimension_numbers = #tpu.dot_dimension_numbers<[1], [0], [0], [1], [0, 0, 1, 1], [], []>} : vector<8x16xf32>, vector<16x32xf32>, vector<8x32xf32> -> vector<8x32xf32>
    %56 = arith.extui %30 : vector<8x32xi1> to vector<8x32xi32>
    %57 = arith.sitofp %56 : vector<8x32xi32> to vector<8x32xf32>
    %c0_20 = arith.constant 0 : index
    %c0_21 = arith.constant 0 : index
    %58 = vector.load %arg4[%c0_20, %c0_21] : memref<32x8xf32, #tpu.memory_space<vmem>>, vector<32x8xf32>
    %cst_22 = arith.constant dense<0.000000e+00> : vector<8x8xf32>
    %59 = tpu.matmul %57, %58, %cst_22 {dimension_numbers = #tpu.dot_dimension_numbers<[1], [0], [0], [1], [0, 0, 1, 1], [], []>} : vector<8x32xf32>, vector<32x8xf32>, vector<8x8xf32> -> vector<8x8xf32>
    %60 = arith.subi %12, %43 : vector<8x1xi32>
    %c0_i32_23 = arith.constant 0 : i32
    %61 = vector.broadcast %c0_i32_23 : i32 to vector<8x1xi32>
    %62 = arith.select %19, %60, %61 : vector<8x1xi1>, vector<8x1xi32>
    %63 = arith.sitofp %62 : vector<8x1xi32> to vector<8x1xf32>
    %c0_24 = arith.constant 0 : index
    %c0_25 = arith.constant 0 : index
    %64 = vector.load %arg7[%c0_24, %c0_25] : memref<1x16xf32, #tpu.memory_space<vmem>>, vector<1x16xf32>
    %65 = vector.broadcast %63 : vector<8x1xf32> to vector<8x16xf32>
    %66 = vector.broadcast %64 : vector<1x16xf32> to vector<8x16xf32>
    %67 = arith.mulf %65, %66 : vector<8x16xf32>
    %c0_26 = arith.constant 0 : index
    %c0_27 = arith.constant 0 : index
    %68 = vector.load %arg8[%c0_26, %c0_27] : memref<1x16xf32, #tpu.memory_space<vmem>>, vector<1x16xf32>
    %69 = vector.broadcast %68 : vector<1x16xf32> to vector<8x16xf32>
    %70 = arith.addf %67, %69 : vector<8x16xf32>
    %71 = math.cos %70 : vector<8x16xf32>
    %72 = arith.extui %19 : vector<8x1xi1> to vector<8x1xi32>
    %73 = arith.sitofp %72 : vector<8x1xi32> to vector<8x1xf32>
    %74 = vector.broadcast %73 : vector<8x1xf32> to vector<8x32xf32>
    %75 = arith.mulf %36, %74 : vector<8x32xf32>
    %76 = vector.broadcast %73 : vector<8x1xf32> to vector<8x32xf32>
    %77 = arith.mulf %55, %76 : vector<8x32xf32>
    %78 = vector.broadcast %73 : vector<8x1xf32> to vector<8x8xf32>
    %79 = arith.mulf %59, %78 : vector<8x8xf32>
    %80 = vector.broadcast %73 : vector<8x1xf32> to vector<8x16xf32>
    %81 = arith.mulf %71, %80 : vector<8x16xf32>
    %82 = tpu.concatenate %75, %77, %79, %81, %36 in 1 : vector<8x32xf32>, vector<8x32xf32>, vector<8x8xf32>, vector<8x16xf32>, vector<8x32xf32> -> vector<8x120xf32>
    %83 = arith.truncf %82 : vector<8x120xf32> to vector<8x120xbf16>
    %c0_28 = arith.constant 0 : index
    %c0_29 = arith.constant 0 : index
    %84 = vector.load %arg9[%c0_28, %c0_29] : memref<120x192xbf16, #tpu.memory_space<vmem>>, vector<120x192xbf16>
    %cst_30 = arith.constant dense<0.000000e+00> : vector<8x192xf32>
    %85 = tpu.matmul %83, %84, %cst_30 {dimension_numbers = #tpu.dot_dimension_numbers<[1], [0], [0], [1], [0, 0, 1, 1], [], []>} : vector<8x120xbf16>, vector<120x192xbf16>, vector<8x192xf32> -> vector<8x192xf32>
    %86 = vector.extract_strided_slice %85 {offsets = [0, 0], sizes = [8, 96], strides = [1, 1]} : vector<8x192xf32> to vector<8x96xf32>
    %87 = vector.extract_strided_slice %85 {offsets = [0, 96], sizes = [8, 96], strides = [1, 1]} : vector<8x192xf32> to vector<8x96xf32>
    %88 = vector.extract_strided_slice %86 {offsets = [0, 0], sizes = [8, 64], strides = [1, 1]} : vector<8x96xf32> to vector<8x64xf32>
    %89 = vector.extract_strided_slice %87 {offsets = [0, 0], sizes = [8, 64], strides = [1, 1]} : vector<8x96xf32> to vector<8x64xf32>
    %90 = arith.addf %88, %89 : vector<8x64xf32>
    %c0_31 = arith.constant 0 : index
    %c0_32 = arith.constant 0 : index
    %91 = vector.load %arg10[%c0_31, %c0_32] : memref<1x64xf32, #tpu.memory_space<vmem>>, vector<1x64xf32>
    %92 = vector.broadcast %91 : vector<1x64xf32> to vector<8x64xf32>
    %93 = arith.addf %90, %92 : vector<8x64xf32>
    %94 = arith.negf %93 : vector<8x64xf32>
    %95 = math.exp %94 : vector<8x64xf32>
    %cst_33 = arith.constant 1.000000e+00 : f32
    %96 = vector.broadcast %cst_33 : f32 to vector<8x64xf32>
    %97 = arith.addf %96, %95 : vector<8x64xf32>
    %98 = arith.divf %96, %97 : vector<8x64xf32>
    %99 = vector.extract_strided_slice %98 {offsets = [0, 0], sizes = [8, 32], strides = [1, 1]} : vector<8x64xf32> to vector<8x32xf32>
    %100 = vector.extract_strided_slice %98 {offsets = [0, 32], sizes = [8, 32], strides = [1, 1]} : vector<8x64xf32> to vector<8x32xf32>
    %101 = vector.extract_strided_slice %86 {offsets = [0, 64], sizes = [8, 32], strides = [1, 1]} : vector<8x96xf32> to vector<8x32xf32>
    %c0_34 = arith.constant 0 : index
    %c0_35 = arith.constant 0 : index
    %102 = vector.load %arg11[%c0_34, %c0_35] : memref<1x32xf32, #tpu.memory_space<vmem>>, vector<1x32xf32>
    %103 = vector.broadcast %102 : vector<1x32xf32> to vector<8x32xf32>
    %104 = arith.addf %101, %103 : vector<8x32xf32>
    %105 = vector.extract_strided_slice %87 {offsets = [0, 64], sizes = [8, 32], strides = [1, 1]} : vector<8x96xf32> to vector<8x32xf32>
    %c0_36 = arith.constant 0 : index
    %c0_37 = arith.constant 0 : index
    %106 = vector.load %arg12[%c0_36, %c0_37] : memref<1x32xf32, #tpu.memory_space<vmem>>, vector<1x32xf32>
    %107 = vector.broadcast %106 : vector<1x32xf32> to vector<8x32xf32>
    %108 = arith.addf %105, %107 : vector<8x32xf32>
    %109 = arith.mulf %99, %108 : vector<8x32xf32>
    %110 = arith.addf %104, %109 : vector<8x32xf32>
    %111 = math.tanh %110 : vector<8x32xf32>
    %cst_38 = arith.constant 1.000000e+00 : f32
    %112 = vector.broadcast %cst_38 : f32 to vector<8x32xf32>
    %113 = arith.subf %112, %100 : vector<8x32xf32>
    %114 = arith.mulf %113, %111 : vector<8x32xf32>
    %115 = arith.mulf %100, %36 : vector<8x32xf32>
    %116 = arith.addf %114, %115 : vector<8x32xf32>
    %c0_39 = arith.constant 0 : index
    %c0_40 = arith.constant 0 : index
    %117 = vector.load %arg13[%c0_39, %c0_40] : memref<8x32xf32, #tpu.memory_space<vmem>>, vector<8x32xf32>
    tpu.vector_store %arg13[%c0_39, %c0_40], %116 {strides = array<i32>} : memref<8x32xf32, #tpu.memory_space<vmem>>, vector<8x32xf32>,
    %c0_i32_41 = arith.constant 0 : i32
    %118 = vector.broadcast %c0_i32_41 : i32 to vector<8x1xi32>
    %119 = arith.maxsi %12, %118 : vector<8x1xi32>
    %c0_i32_42 = arith.constant 0 : i32
    %120 = vector.broadcast %c0_i32_42 : i32 to vector<8x1xi32>
    %121 = arith.select %19, %119, %120 : vector<8x1xi1>, vector<8x1xi32>
    %c0_43 = arith.constant 0 : index
    %c0_44 = arith.constant 0 : index
    %122 = vector.load %arg14[%c0_43, %c0_44] : memref<8x1xi32, #tpu.memory_space<vmem>>, vector<8x1xi32>
    tpu.vector_store %arg14[%c0_43, %c0_44], %121 {strides = array<i32>} : memref<8x1xi32, #tpu.memory_space<vmem>>, vector<8x1xi32>,
    return
  }
}

</mosaic_0001>

<bundles_post_ra>
// kernel: tgn_get_updated_memory.1
= control target key start
LH: loop header
LB: loop body
LE: loop exit
PB: predicated region body
PF: predicated region fallthrough
CT: control target
= control target key end

     0   :  { %v945_v1 = vmov 0   ;;  %v946_v2 = vmov 0.0|0.0   ;;  %vm947_vm0 = vmmov 0   ;;  %v948_v6 = vmov 0.0   ;;  %s1261_s0 = inlined_call_operand.vmem [shape: s32[8,1], index: 0, kind: input, shape index: {}]   ;;  %s1262_s1 = inlined_call_operand.vmem [shape: s32[1,32], index: 1, kind: input, shape index: {}]   ;;  %s1263_s2 = inlined_call_operand.vmem [shape: s32[1,32], index: 2, kind: input, shape index: {}]   ;;  %s1264_s3 = inlined_call_operand.vmem [shape: s32[1,32], index: 3, kind: input, shape index: {}]   ;;  %s1265_s4 = inlined_call_operand.vmem [shape: f32[32,8], index: 4, kind: input, shape index: {}]   ;;  %s1266_s5 = inlined_call_operand.vmem [shape: f32[16,32], index: 5, kind: input, shape index: {}]   ;;  %s1267_s6 = inlined_call_operand.vmem [shape: s32[1,16], index: 6, kind: input, shape index: {}]   ;;  %s1268_s7 = inlined_call_operand.vmem [shape: f32[1,16], index: 7, kind: input, shape index: {}]   ;;  %s1269_s8 = inlined_call_operand.vmem [shape: f32[1,16], index: 8, kind: input, shape index: {}]   ;;  %s1270_s9 = inlined_call_operand.vmem [shape: bf16[120,192], index: 9, kind: input, shape index: {}]   ;;  %s1271_s10 = inlined_call_operand.vmem [shape: f32[1,64], index: 10, kind: input, shape index: {}]   ;;  %s1272_s11 = inlined_call_operand.vmem [shape: f32[1,32], index: 11, kind: input, shape index: {}]   ;;  %s1273_s12 = inlined_call_operand.vmem [shape: f32[1,32], index: 12, kind: input, shape index: {}]   ;;  %s1274_s13 = inlined_call_operand.hbm [shape: f32[8,32], index: 13, kind: output, shape index: {0}]   ;;  %s1275_s14 = inlined_call_operand.vmem [shape: s32[8,1], index: 14, kind: output, shape index: {1}]  }
   0x1   :  { %v50_v0 = vld [vmem:[%s1261_s0] sm:$0xff]  ;;  %887 = vset.pattern.permute.xlu0 %v945_v1  ;;  %855 = vmatprep.subr.bf16.mxu0 %v946_v2  ;;  %v49_v4 = vld [vmem:[%s1266_s5 + $0x8] sm:$0xff] }
   0x2   :  { %v48_v3 = vld [vmem:[%s1266_s5] sm:$0xff]  ;;  %53 = vperm.xlu0 %887, %v50_v0   ;;  %676 = vmatprep.mubr.bf16.mxu1 %v945_v1 }
   0x3   :  { %v856_v5 = vpack.c.bf16 %v49_v4, %v48_v3  ;;  %834 = vmatprep.mubr.msk.f32.mxu0 %vm947_vm0, %v948_v6 }
   0x5   :  { %857 = vmatpush3.bf16.msra.mxu0 %v856_v5 }
   0x6   :  { %858 = vmatprep.subr.bf16.mxu0 %v946_v2 }
   0x7   :  { %20 = vsyncpa [#allocation3], 0  ;;  %v99_v7 = vlaneseq  ;;  %v778_v9 = vld [vmem:[%s1262_s1] ss:$0 sm:$0xff]  ;;  %vm124_vm1 = vcmask 130048   ;;  %vm66_vm2 = vcmask 261120  }
   0x8   :  { %v779_v10 = vld [vmem:[%s1264_s3] ss:$0 sm:$0xff]  ;;  %vm758_vm14 = vcmask 7168   ;;  %s955_s18 = smov 32   ;;  %s956_s5 = smov 88  }
   0x9   :  { %v1051_v8 = vand.u32 127, %v99_v7  ;;  %v783_v42 = vld [vmem:[%s1263_s2] ss:$0 sm:$0xff]  ;;  %s957_s3 = smov 64  }
   0xa   :  { %v782_v48 = vld [vmem:[%s1267_s6] ss:$0 sm:$0xff] }
   0xb   :  { %v314_v4 = vld [vmem:[%s1265_s4] sm:$0xff] }
  0x81   :  { %v54_v11 = vpop.permute.xlu0 %53 }
  0x82   :  { %vm59_vm3 = vcmp.eq.s32.totalorder %v54_v11, %v778_v9  ;;  %vm121_vm4 = vcmp.eq.s32.totalorder %v54_v11, %v1051_v8 }
  0x83   :  { %v780_v12 = vsel %vm121_vm4, 1.0, %v948_v6  ;;  %v65_v13 = vsel %vm59_vm3, %v779_v10, 2147483649  ;;  %v82_v47 = vsel %vm59_vm3, 1, %v945_v1  ;;  %v203_v52 = vsel %vm121_vm4, %v782_v48, 0 }
  0x84   :  { %835 = vmatmul.mubr.msk.f32.vlgmr.msra.gmra.mrb[0].mxu0 %vm124_vm1, %v780_v12  ;;  %v67_v14 = vsel %vm66_vm2, %v65_v13, 2147483648  ;;  %v83_v51 = vsel %vm66_vm2, %v82_v47, 2147483648  ;;  %v204_v55 = vsel %vm124_vm1, %v203_v52, 0  ;;  %v316_v12 = vld [vmem:[%s1265_s4 + $0x10] sm:$0xff] }
  0x85   :  { %v69_v15 = vshra.s32 %v67_v14, 16  ;;  %860 = vmatpush3.bf16.msra.mxu0 %v856_v5  ;;  %841 = vmatprep.mubr.msk.f32.mxu0 %vm947_vm0, %v948_v6  ;;  %v68_v17 = vand.u32 65535, %v67_v14  ;;  %v85_v54 = vshra.s32 %v83_v51, 16  ;;  %v206_v57 = vshrl.u32 %v204_v55, 16  ;;  %v315_v5 = vld [vmem:[%s1265_s4 + $0x8] sm:$0xff] }
  0x86   :  { %861 = vmatprep.subr.bf16.mxu0 %v946_v2  ;;  %v205_v59 = vand.u32 65535, %v204_v55  ;;  %v84_v0 = vand.u32 65535, %v83_v51  ;;  %v862_v11 = vpack.c.bf16 %v315_v5, %v314_v4  ;;  %v949_v51 = vmov 683565275  }
  0x87   :  { %v71_v16 = vcvt.s32.f32 %v69_v15  ;;  %v70_v19 = vcvt.s32.f32 %v68_v17  ;;  %v87_v56 = vcvt.s32.f32 %v85_v54  ;;  %v208_v58 = vcvt.s32.f32 %v206_v57  ;;  %v888_v17 = vld [vmem:[%s1270_s9 + $0x4] ss:$8 sps:$4 sm:$0xff]  }
  0x88   :  { %v207_v60 = vcvt.s32.f32 %v205_v59  ;;  %v86_v10 = vcvt.s32.f32 %v84_v0  ;;  %644 = vmatprep.subr.bf16.mxu1 %v888_v17  ;;  %v952_v59 = vmov 2102212464  }
  0x89   :  { %72 = vmax.xlane.f32.xlu0 %v71_v16 }
 0x116   :  { %v73_v18 = vpop.xlane.xlu0 %72 }
 0x117   :  { %vm74_vm5 = vcmp.eq.f32.partialorder %v71_v16, %v73_v18  ;;  %v79_v23 = vcvt.f32.s32 %v73_v18  ;;  %v890_v18 = vld [vmem:[%s1270_s9] ss:$8 sps:$4 sm:$0xff]  }
 0x118   :  { %v75_v20 = vsel %vm74_vm5, %v70_v19, -inf  ;;  %v891_v19 = vld [vmem:[%s1270_s9 + $0x14] ss:$8 sps:$4 sm:$0xff]   ;;  %645 = vmatpush1.bf16.msra.mxu1 %v890_v18 }
 0x119   :  { %76 = vmax.xlane.f32.xlu1 %v75_v20  ;;  %v80_v25 = vshll.u32 %v79_v23, 16  ;;  %646 = vmatprep.subr.bf16.mxu1 %v891_v19 }
 0x157   :  { %v1069_v21 = vpop.f32.mrb[0].mxu0 }
 0x158   :  { %v836_v22 = vpop.f32.mrb[1].mxu0 }
 0x1a6   :  { %v77_v24 = vpop.xlane.xlu1 %76 }
 0x1a7   :  { %v78_v26 = vcvt.f32.s32 %v77_v24 }
 0x1a9   :  { %v1071_v27 = vadd.s32 %v80_v25, %v78_v26 }
 0x1ab   :  { %vm101_vm6 = vcmp.eq.s32.totalorder %v65_v13, %v1071_v27  ;;  %v317_v13 = vld [vmem:[%s1265_s4 + $0x18] sm:$0xff]  ;;  %vm755_vm13 = vcmp.gt.s32.totalorder %v1071_v27, 0 }
 0x1ac   :  { %vm1075_vm7 = vmand %vm59_vm3, %vm101_vm6  ;;  %v865_v16 = vpack.c.bf16 %v317_v13, %v316_v12 }
 0x1ad   :  { %v103_v29 = vsel %vm1075_vm7, %v1051_v8, 4294967295 }
 0x1ae   :  { %v104_v30 = vsel %vm66_vm2, %v103_v29, 2147483648 }
 0x1af   :  { %v106_v31 = vshra.s32 %v104_v30, 16  ;;  %v105_v33 = vand.u32 65535, %v104_v30 }
 0x1b1   :  { %v108_v32 = vcvt.s32.f32 %v106_v31  ;;  %v107_v35 = vcvt.s32.f32 %v105_v33 }
 0x1b3   :  { %109 = vmax.xlane.f32.xlu1 %v108_v32 }
 0x240   :  { %v110_v34 = vpop.xlane.xlu1 %109 }
 0x241   :  { %vm111_vm8 = vcmp.eq.f32.partialorder %v108_v32, %v110_v34  ;;  %v116_v37 = vcvt.f32.s32 %v110_v34 }
 0x242   :  { %v112_v36 = vsel %vm111_vm8, %v107_v35, -inf  ;;  %v790_v35 = vld [vmem:[%s1268_s7] ss:$0 sm:$0xff] }
 0x243   :  { %113 = vmax.xlane.f32.xlu1 %v112_v36  ;;  %v117_v39 = vshll.u32 %v116_v37, 16  ;;  %v756_v36 = vsel %vm755_vm13, %v1071_v27, 0  ;;  %v791_v37 = vld [vmem:[%s1269_s8] ss:$0 sm:$0xff] }
 0x2d0   :  { %v114_v38 = vpop.xlane.xlu1 %113 }
 0x2d1   :  { %v115_v40 = vcvt.f32.s32 %v114_v38 }
 0x2d3   :  { %v118_v41 = vadd.s32 %v117_v39, %v115_v40 }
 0x2d5   :  { %vm119_vm9 = vcmp.eq.s32.totalorder %v1051_v8, %v118_v41 }
 0x2d6   :  { %vm1089_vm10 = vmand %vm1075_vm7, %vm119_vm9 }
 0x2d7   :  { %v222_v44 = vsel %vm1089_vm10, %v783_v42, 0 }
 0x2d8   :  { %v223_v45 = vsel %vm66_vm2, %v222_v44, 0 }
 0x2d9   :  { %v225_v46 = vshrl.u32 %v223_v45, 16  ;;  %v224_v50 = vand.u32 65535, %v223_v45 }
 0x2db   :  { %v227_v49 = vcvt.s32.f32 %v225_v46  ;;  %v226_v53 = vcvt.s32.f32 %v224_v50 }
 0x2dd   :  { %230 = vadd.xlane.f32.xlu1 %v227_v49 }
 0x2e1   :  { %228 = vadd.xlane.f32.xlu1 %v226_v53  ;;  %v950_v53 = vmov 2475754826  }
 0x2e5   :  { %88 = vmax.xlane.f32.xlu1 %v87_v56 }
 0x2e9   :  { %211 = vadd.xlane.f32.xlu1 %v208_v58 }
 0x2ed   :  { %209 = vadd.xlane.f32.xlu1 %v207_v60 }
 0x36a   :  { %v231_v61 = vpop.xlane.xlu1 %230 }
 0x36b   :  { %v233_v62 = vcvt.f32.s32 %v231_v61 }
 0x36d   :  { %v234_v1 = vshll.u32 %v233_v62, 16  ;;  %v953_v62 = vmov 920167782  }
 0x36e   :  { %v229_v63 = vpop.xlane.xlu1 %228 }
 0x36f   :  { %v232_v3 = vcvt.f32.s32 %v229_v63 }
 0x371   :  { %v235_v7 = vadd.s32 %v234_v1, %v232_v3  ;;  %v954_v1 = vmov 1326507024  }
 0x372   :  { %v89_v9 = vpop.xlane.xlu1 %88 }
 0x373   :  { %vm236_vm11 = vcmp.eq.s32.totalorder %v235_v7, %v1051_v8  ;;  %vm90_vm12 = vcmp.eq.f32.partialorder %v87_v56, %v89_v9  ;;  %v786_v8 = vsel %vm1089_vm10, 1.0, %v948_v6  ;;  %v95_v28 = vcvt.f32.s32 %v89_v9 }
 0x374   :  { %v784_v14 = vsel %vm236_vm11, 1.0, %v948_v6  ;;  %v91_v15 = vsel %vm90_vm12, %v86_v10, -inf  ;;  %v951_v56 = vmov 2131351028   ;;  %vm637_vm10 = vcmask 1043456  }
 0x375   :  { %92 = vmax.xlane.f32.xlu1 %v91_v15  ;;  %842 = vmatmul.mubr.msk.f32.vlgmr.msra.gmra.mrb[2].mxu0 %vm124_vm1, %v784_v14  ;;  %v96_v31 = vshll.u32 %v95_v28, 16 }
 0x376   :  { %863 = vmatpush3.bf16.msra.mxu0 %v862_v11  ;;  %852 = vmatprep.mubr.msk.f32.mxu0 %vm947_vm0, %v948_v6  ;;  %v212_v20 = vpop.xlane.xlu1 %211 }
 0x377   :  { %864 = vmatprep.subr.bf16.mxu0 %v946_v2  ;;  %v893_v2 = vld [vmem:[%s1270_s9 + $0x10] ss:$8 sps:$4 sm:$0xff]   ;;  %v214_v23 = vcvt.f32.s32 %v212_v20 }
 0x378   :  { %647 = vmatpush1.bf16.msra.mxu1 %v893_v2 }
 0x379   :  { %v215_v25 = vshll.u32 %v214_v23, 16 }
 0x37a   :  { %866 = vmatpush3.bf16.msra.mxu0 %v865_v16  ;;  %v210_v22 = vpop.xlane.xlu1 %209 }
 0x37b   :  { %v213_v24 = vcvt.f32.s32 %v210_v22 }
 0x37d   :  { %853 = vmatmul.mubr.msk.f32.vlgmr.msra.gmra.mrb[4].mxu0 %vm66_vm2, %v786_v8  ;;  %v216_v26 = vadd.s32 %v215_v25, %v213_v24 }
 0x37f   :  { %v391_v29 = vsub.s32 %v1071_v27, %v216_v26 }
 0x381   :  { %v788_v34 = vcvt.s32.f32 %v391_v29 }
 0x402   :  { %v93_v30 = vpop.xlane.xlu1 %92 }
 0x403   :  { %v94_v32 = vcvt.f32.s32 %v93_v30 }
 0x405   :  { %v1141_v33 = vadd.s32 %v96_v31, %v94_v32 }
 0x407   :  { %vm98_vm15 = vcmp.gt.s32.totalorder %v1141_v33, 0 }
 0x408   :  { %v789_v38 = vsel %vm98_vm15, %v788_v34, 0.0  ;;  %v757_v39 = vsel %vm98_vm15, %v756_v36, 0 }
 0x409   :  { %v401_v40 = vmul.f32 %v790_v35, %v789_v38  ;;  %759 = vst.msk [vmem:[%s1275_s14] sm:$0xff] %vm758_vm14, %v757_v39  ;;  %s959_s14 = smov 96  }
 0x40b   :  { %v1158_v41 = vadd.f32 %v791_v37, %v401_v40 }
 0x40d   :  { %v413_v27 = vand.u32 2139095040, %v1158_v41  ;;  %v410_v45 = vand.u32 2147483647, %v1158_v41  ;;  %vm412_vm8 = vcmp.lt.s32.totalorder %v1158_v41, 0  ;;  %vm502_vm14 = vweird.f32 %v1158_v41 }
 0x40f   :  { %v414_v42 = vshrl.u32 %v413_v27, 23  ;;  %v417_v49 = vand.u32 8388607, %v410_v45  ;;  %vm1208_vm9 = vcmp.le.f32.partialorder %v410_v45, 0.7853982 }
 0x411   :  { %v792_v43 = vadd.s32 4294967169, %v414_v42  ;;  %v418_v4 = vor.u32 8388608, %v417_v49  ;;  %v896_v49 = vld [vmem:[%s1270_s9 + $0x20] ss:$8 sps:$4 sm:$0xff]  }
 0x413   :  { %v420_v44 = vadd.s32 1, %v792_v43  ;;  %v458_v19 = vshll.u32 %v418_v4, 8 }
 0x415   :  { %vm421_vm0 = vcmp.gt.s32.totalorder %v420_v44, 0 }
 0x416   :  { %v422_v46 = vsel %vm421_vm0, %v420_v44, 0  ;;  %vm538_vm0 = vcmask 588800  }
 0x417   :  { %v424_v47 = vand.u32 31, %v422_v46  ;;  %v423_v50 = vshrl.u32 %v422_v46, 5 }
 0x419   :  { %v425_v48 = vsub.s32 32, %v424_v47  ;;  %v427_v52 = vshll.u32 %v949_v51, %v424_v47  ;;  %v430_v54 = vshll.u32 %v950_v53, %v424_v47  ;;  %v433_v58 = vshll.u32 %v951_v56, %v424_v47 }
 0x41a   :  { %v436_v61 = vshll.u32 %v952_v59, %v424_v47  ;;  %v439_v0 = vshll.u32 %v953_v62, %v424_v47  ;;  %vm442_vm1 = vcmp.lt.s32.totalorder %v423_v50, 1  ;;  %vm445_vm3 = vcmp.lt.s32.totalorder %v423_v50, 4 }
 0x41b   :  { %v428_v55 = vshrl.u32 %v950_v53, %v425_v48  ;;  %v431_v57 = vshrl.u32 %v951_v56, %v425_v48  ;;  %v434_v60 = vshrl.u32 %v952_v59, %v425_v48  ;;  %v437_v63 = vshrl.u32 %v953_v62, %v425_v48  ;;  %v897_v53 = vld [vmem:[%s1270_s9 + $0x34] ss:$8 sps:$4 sm:$0xff]  }
 0x41c   :  { %v440_v3 = vshrl.u32 %v954_v1, %v425_v48  ;;  %v426_v15 = vshrl.u32 %v949_v51, %v425_v48  ;;  %vm444_vm4 = vcmp.lt.s32.totalorder %v423_v50, 3  ;;  %vm443_vm5 = vcmp.lt.s32.totalorder %v423_v50, 2  ;;  %v894_v48 = vld [vmem:[%s1270_s9 + $0x24] ss:$8 sps:$4 sm:$0xff]   ;;  %v903_v62 = vld [vmem:[%s1270_s9 + $0x54] ss:$8 sps:$4 sm:$0xff]  }
 0x41d   :  { %v429_v5 = vor.u32 %v428_v55, %v427_v52  ;;  %v432_v7 = vor.u32 %v431_v57, %v430_v54  ;;  %v435_v9 = vor.u32 %v434_v60, %v433_v58  ;;  %v438_v10 = vor.u32 %v437_v63, %v436_v61  ;;  %648 = vmatprep.subr.bf16.mxu1 %v894_v48  ;;  %v899_v54 = vld [vmem:[%s1270_s9 + $0x30] ss:$8 sps:$4 sm:$0xff]   ;;  %v900_v60 = vld [vmem:[%s1270_s9 + $0x44] ss:$8 sps:$4 sm:$0xff]   ;;  %v902_v61 = vld [vmem:[%s1270_s9 + $0x40] ss:$8 sps:$4 sm:$0xff]  }
 0x41e   :  { %v441_v11 = vor.u32 %v440_v3, %v439_v0  ;;  %649 = vmatpush1.bf16.msra.mxu1 %v896_v49  ;;  %v796_v0 = vsel %vm98_vm15, 1.0, %v948_v6  ;;  %vm536_vm15 = vcmask 523264   ;;  %v817_v49 = vld [vmem:[%s1272_s11] ss:$0 sm:$0xff] }
 0x41f   :  { %v447_v12 = vsel %vm445_vm3, %v435_v9, 2102212464  ;;  %v450_v13 = vsel %vm442_vm1, %v429_v5, %v432_v7  ;;  %v454_v14 = vsel %vm442_vm1, %v432_v7, %v435_v9  ;;  %v451_v16 = vsel %vm445_vm3, %v438_v10, 920167782  ;;  %650 = vmatprep.subr.bf16.mxu1 %v897_v53 }
 0x420   :  { %v455_v8 = vsel %vm445_vm3, %v441_v11, 1326507024  ;;  %v452_v17 = vsel %vm444_vm4, %v435_v9, %v451_v16  ;;  %v446_v2 = vsel %vm442_vm1, %v426_v15, %v429_v5  ;;  %v448_v20 = vsel %vm444_vm4, %v432_v7, %v447_v12  ;;  %v905_v5 = vld [vmem:[%s1270_s9 + $0x50] ss:$8 sps:$4 sm:$0xff]   ;;  %v906_v9 = vld [vmem:[%s1270_s9 + $0x64] ss:$8 sps:$4 sm:$0xff]  }
 0x421   :  { %v456_v18 = vsel %vm444_vm4, %v438_v10, %v455_v8  ;;  %v453_v22 = vsel %vm443_vm5, %v450_v13, %v452_v17  ;;  %v449_v29 = vsel %vm443_vm5, %v446_v2, %v448_v20  ;;  %v908_v12 = vld [vmem:[%s1270_s9 + $0x60] ss:$8 sps:$4 sm:$0xff]   ;;  %v557_v16 = vld [vmem:[%s1270_s9 + $0x70] sm:$0xff]  ;;  %s958_s9 = smov 72   ;;  %vm540_vm1 = vcmask 719872  }
 0x422   :  { %v457_v23 = vsel %vm443_vm5, %v454_v14, %v456_v18  ;;  %v1167_v26 = vmul.u32.u64.low %v458_v19, %v453_v22  ;;  %v1168_v28 = vmul.u32.u64.high %v458_v19, %v453_v22, %v1167_v26  ;;  %v465_v31 = vmul.u32 %v458_v19, %v449_v29  ;;  %651 = vmatpush1.bf16.msra.mxu1 %v899_v54 }
 0x423   :  { %v1164_v24 = vmul.u32.u64.low %v458_v19, %v457_v23  ;;  %v1165_v25 = vmul.u32.u64.high %v458_v19, %v457_v23, %v1164_v24  ;;  %652 = vmatprep.subr.bf16.mxu1 %v900_v60  ;;  %v812_v17 = vcombine.high %v557_v16, %v557_v16  ;;  %v811_v18 = vcombine.low %v557_v16, %v557_v16 }
 0x424   :  { %v468_v30 = vadd.s32 1, %v1168_v28  ;;  %vm633_vm3 = vcmask 982016  }
 0x425   :  { %vm467_vm6 = vc.u32 %v1165_v25, %v1167_v26  ;;  %v466_v44 = vadd.s32 %v1167_v26, %v1165_v25  ;;  %v639_v19 = vsel %vm637_vm10, %v811_v18, 0 }
 0x426   :  { %v469_v32 = vsel %vm467_vm6, %v468_v30, %v1168_v28  ;;  %653 = vmatpush1.bf16.msra.mxu1 %v902_v61 }
 0x427   :  { %v470_v34 = vadd.s32 %v469_v32, %v465_v31  ;;  %654 = vmatprep.subr.bf16.mxu1 %v903_v62  ;;  %v818_v31 = vld [vmem:[%s1273_s12] ss:$0 sm:$0xff] }
 0x429   :  { %v471_v35 = vadd.s32 536870912, %v470_v34 }
 0x42a   :  { %655 = vmatpush1.bf16.msra.mxu1 %v905_v5 }
 0x42b   :  { %v472_v36 = vshrl.u32 %v471_v35, 30  ;;  %656 = vmatprep.subr.bf16.mxu1 %v906_v9  ;;  %v515_v35 = vmul.f32 %v796_v0, %v1069_v21 }
 0x42d   :  { %v473_v37 = vshll.u32 %v472_v36, 30  ;;  %v496_v10 = vsub.s32 4, %v472_v36 }
 0x42e   :  { %657 = vmatpush1.bf16.msra.mxu1 %v908_v12 }
 0x42f   :  { %v474_v38 = vsub.s32 %v470_v34, %v473_v37  ;;  %v497_v13 = vsel %vm412_vm8, %v496_v10, %v472_v36  ;;  %813 = vmatprep.subr.msk.bf16.mxu1 %vm637_vm10, %v812_v17 }
 0x430   :  { %v499_v8 = vsel %vm1208_vm9, 0, %v497_v13 }
 0x431   :  { %v476_v39 = vsub.s32 0, %v474_v38  ;;  %v503_v2 = vand.u32 3, %v499_v8 }
 0x432   :  { %659 = vmatpush1.bf16.msra.mxu1 %v639_v19 }
 0x433   :  { %v793_v40 = vmin.u32 %v476_v39, %v474_v38  ;;  %vm508_vm11 = vcmp.eq.s32.totalorder %v503_v2, 2  ;;  %vm505_vm12 = vcmp.eq.s32.totalorder %v503_v2, 0  ;;  %vm504_vm13 = vcmp.lt.s32.totalorder %v503_v2, 2 }
 0x435   :  { %v478_v27 = vclz %v793_v40 }
 0x437   :  { %v794_v42 = vadd.s32 4294967294, %v478_v27 }
 0x439   :  { %vm795_vm7 = vcmp.lt.s32.totalorder %v794_v42, 0 }
 0x43a   :  { %v481_v43 = vsel %vm795_vm7, 0, %v794_v42 }
 0x43b   :  { %v482_v46 = vsub.s32 32, %v481_v43  ;;  %v486_v47 = vsub.s32 4294967266, %v481_v43  ;;  %v483_v50 = vshll.u32 %v474_v38, %v481_v43 }
 0x43d   :  { %v484_v51 = vshrl.u32 %v466_v44, %v482_v46  ;;  %v487_v52 = vadd.s32 127, %v486_v47 }
 0x43f   :  { %v485_v55 = vor.u32 %v484_v51, %v483_v50  ;;  %v488_v56 = vshll.u32 %v487_v52, 23  ;;  %v815_v52 = vld [vmem:[%s1271_s10] ss:$0 sm:$0xff]  ;;  %s960_s10 = smov [#allocation2]  }
 0x440   :  { %s766_s11 = sshll.u32 %s960_s10, 4  ;;  %s767_s11 = int_to_ptr.vmem [resolvable:$true] %s766_s11 }
 0x441   :  { %v489_v57 = vor.u32 4788187, %v488_v56  ;;  %v492_v59 = vcvt.s32.f32 %v485_v55  ;;  %s921_s6 = scalar_lea.vmem %s767_s11, 128  ;;  %p926_p1 = scmp.lt.s32.totalorder %s767_s11, %s767_s11 }
 0x442   :  { %p922_p0 = scmp.ne.s32.totalorder %s767_s11, %s921_s6  ;;  %p927_p2 = scmp.lt.s32.totalorder %s921_s6, %s921_s6 }
 0x443   :  { %v490_v58 = vand.u32 2147483647, %v489_v57 }
 0x444   :  { %p928_p3 = por %p927_p2, %p926_p1 }
 0x445   :  { %v493_v1 = vmul.f32 %v492_v59, %v490_v58 }
 0x446   :  { %p929_p4 = pnand %p928_p3, %p922_p0 }
 0x447   :  { %v494_v7 = vxor.u32 2147483648, %v493_v1 }
 0x448   :  { %v308_v63 = vpop.f32.mrb[2].mxu0 }
 0x449   :  { %v516_v3 = vmul.f32 %v796_v0, %v308_v63  ;;  %v843_v4 = vpop.f32.mrb[3].mxu0  ;;  %v495_v33 = vsel %vm412_vm8, %v494_v7, %v493_v1 }
 0x44a   :  { %v498_v11 = vsel %vm1208_vm9, %v1158_v41, %v495_v33 }
 0x44b   :  { %520 = vrot.lane.b32.xlu0 %v516_v3, %s955_s18  ;;  %911 = vcosq.f32 %v498_v11 }
 0x44c   :  { %913 = vsinq.f32 %v498_v11 }
 0x44f   :  { %532 = vrot.lane.b32.xlu0 %v1069_v21, %s956_s5 }
 0x450   :  { %v387_v45 = vpop.f32.mrb[4].mxu0 }
 0x451   :  { %v517_v14 = vmul.f32 %v796_v0, %v387_v45  ;;  %v854_v15 = vpop.f32.mrb[5].mxu0 }
 0x453   :  { %524 = vrot.lane.b32.xlu1 %v517_v14, %s957_s3 }
 0x455   :  { %v912_v20 = vpop.eup %911 }
 0x456   :  { %v914_v22 = vpop.eup %913  ;;  %v509_v23 = vxor.u32 2147483648, %v912_v20 }
 0x457   :  { %v506_v24 = vxor.u32 2147483648, %v914_v22 }
 0x458   :  { %v510_v25 = vsel %vm508_vm11, %v509_v23, %v914_v22 }
 0x459   :  { %v507_v26 = vsel %vm505_vm12, %v912_v20, %v506_v24 }
 0x45a   :  { %v511_v28 = vsel %vm504_vm13, %v507_v26, %v510_v25 }
 0x45b   :  { %v512_v29 = vsel %vm502_vm14, nan, %v511_v28 }
 0x45c   :  { %v518_v30 = vmul.f32 %v796_v0, %v512_v29 }
 0x45e   :  { %528 = vrot.lane.b32.xlu1 %v518_v30, %s958_s9 }
 0x462   :  { %724 = vrot.lane.b32.xlu1 %v818_v31, %s955_s18 }
 0x4bd   :  { %v521_v32 = vpop.permute.xlu0 %520 }
 0x4be   :  { %v535_v36 = vsel %vm66_vm2, %v515_v35, %v521_v32 }
 0x4c1   :  { %v533_v38 = vpop.permute.xlu0 %532 }
 0x4c5   :  { %v525_v34 = vpop.permute.xlu1 %524 }
 0x4c6   :  { %v537_v41 = vsel %vm536_vm15, %v535_v36, %v525_v34 }
 0x4d0   :  { %v529_v37 = vpop.permute.xlu1 %528 }
 0x4d1   :  { %v539_v39 = vsel %vm538_vm0, %v537_v41, %v529_v37 }
 0x4d2   :  { %v541_v40 = vsel %vm540_vm1, %v539_v39, %v533_v38 }
 0x4d3   :  { %v542_v27 = vpack.c.bf16 %v541_v40, %v541_v40 }
 0x4d4   :  { %v725_v42 = vpop.permute.xlu1 %724 }
 0x4d5   :  { %814 = vmatmul.mubr.msk.bf16.vlgmr.msra.gmra.mrb[0].mxu1 %vm633_vm3, %v542_v27 }
 0x5a8   :  { %v678_v43 = vpop.f32.mrb[0].mxu1 }
 0x5a9   :  { %687 = vrot.lane.b32.xlu0 %v678_v43, %s955_s18  ;;  %v680_v44 = vpop.f32.mrb[1].mxu1 }
 0x5aa   :  { %v727_v46 = vadd.f32 %v725_v42, %v680_v44  ;;  %689 = vrot.lane.b32.xlu1 %v680_v44, %s955_s18  ;;  %v682_v47 = vpop.f32.mrb[2].mxu1 }
 0x5ab   :  { %v683_v48 = vpop.f32.mrb[3].mxu1 }
 0x5ad   :  { %729 = vrot.lane.b32.xlu0 %v727_v46, %s959_s14 }
 0x5ae   :  { %714 = vrot.lane.b32.xlu1 %v817_v49, %s957_s3 }
 0x61b   :  { %v688_v50 = vpop.permute.xlu0 %687 }
 0x61c   :  { %v690_v51 = vpop.permute.xlu1 %689 }
 0x61d   :  { %v691_v53 = vsel %vm66_vm2, %v688_v50, %v690_v51 }
 0x61e   :  { %v693_v54 = vadd.f32 %v691_v53, %v678_v43 }
 0x61f   :  { %v730_v60 = vpop.permute.xlu0 %729 }
 0x620   :  { %v701_v55 = vadd.f32 %v815_v52, %v693_v54  ;;  %v715_v62 = vpop.permute.xlu1 %714 }
 0x621   :  { %v717_v63 = vadd.f32 %v715_v62, %v678_v43 }
 0x622   :  { %v816_v56 = vmul.f32 -1.442695, %v701_v55 }
 0x624   :  { %915 = vpow2.f32 %v816_v56 }
 0x62e   :  { %v916_v57 = vpop.eup %915 }
 0x62f   :  { %v705_v58 = vadd.f32 1.0, %v916_v57 }
 0x631   :  { %917 = vrcp.f32 %v705_v58 }
 0x63b   :  { %v918_v59 = vpop.eup %917 }
 0x63c   :  { %v732_v61 = vmul.f32 %v918_v59, %v730_v60  ;;  %v739_v5 = vsub.f32 1.0, %v918_v59 }
 0x63e   :  { %734 = vrot.lane.b32.xlu0 %v732_v61, %s957_s3 }
 0x642   :  { %745 = vrot.lane.b32.xlu0 %v1069_v21, %s955_s18 }
 0x6b0   :  { %v735_v0 = vpop.permute.xlu0 %734 }
 0x6b1   :  { %v737_v1 = vadd.f32 %v735_v0, %v717_v63 }
 0x6b3   :  { %919 = vtanh.f32 %v737_v1 }
 0x6b4   :  { %v746_v4 = vpop.permute.xlu0 %745 }
 0x6b5   :  { %v748_v9 = vmul.f32 %v918_v59, %v746_v4 }
 0x6bd   :  { %v920_v3 = vpop.eup %919 }
 0x6be   :  { %741 = vrot.lane.b32.xlu1 %v920_v3, %s959_s14 }
 0x730   :  { %v742_v7 = vpop.permute.xlu1 %741 }
 0x731   :  { %v744_v6 = vmul.f32 %v742_v7, %v739_v5 }
 0x733   :  { %v749_v33 = vadd.f32 %v748_v9, %v744_v6 }
 0x735   :  { %751 = vrot.lane.b32.xlu1 %v749_v33, %s959_s14 }
 0x7a7   :  { %v752_v21 = vpop.permute.xlu1 %751 }
 0x7a8   :  { %754 = vst.msk [vmem:[#allocation2] sm:$0xff] %vm66_vm2, %v752_v21 }
 0x7a9   :  { %932 = shalt.err (!%p929_p4)
}
 0x7aa   :  { %s933_s25 = scalar_lea.hbm %s1274_s13, 128 }
 0x7ab   :  { %p934_p5 = scmp.ne.s32.totalorder %s1274_s13, %s933_s25  ;;  %p937_p6 = scmp.lt.u32.totalorder %s933_s25, %s1274_s13 }
 0x7ad   :  { %p939_p7 = pnand %p937_p6, %p934_p5 }
 0x7af   :  { %942 = shalt.err (!%p939_p7)
}
 0x7b0   :  { %769 = dma.vmem_to_hbm [thread:$0]  %s767_s11, 128, %s1274_s13, [#allocation3]  }
 0x7b1   :  { %943 = dma.done.wait [#allocation3], 128  }
 0x7b2   :  { %944 = vsyncadd [#allocation3], 4294967168 }
 0x7b3   :  { %777 = vsyncpa [#allocation3], 1 }

</bundles_post_ra>
